<compile_context>
chip_gen: v7x
topology: tpu7x:2x2x1
jax: 0.10.0
libtpu: 0.0.40
codegen_flags: <defaults>
</compile_context>

<pallas_src>
import jax
import jax.numpy as jnp
from jax.experimental import pallas as pl
from jax.experimental.pallas import tpu as pltpu


def _round_up(n, m):
    return ((n + m - 1) // m) * m


def _matmul_kernel(x_ref, w_ref, o_ref):
    """One (tn, K) @ (K, M) matmul per grid step; W is the resident collapsed weight."""
    o_ref[...] = jnp.dot(
        x_ref[...], w_ref[...], preferred_element_type=jnp.float32
    ).astype(o_ref.dtype)


def _pick_row_tile(n_rows, bytes_per_row, resident_bytes, vmem_budget, min_steps):
    """Largest 8-aligned row tile fitting the VMEM budget, capped for >=min_steps grid steps."""
    if n_rows <= 8:
        return n_rows  # single block whose sublane dim equals the full array dim
    budget_rows = max(8, (vmem_budget - resident_bytes) // (2 * bytes_per_row))
    budget_rows = (budget_rows // 8) * 8
    floor_rows = min(_round_up(n_rows, 8), 256)          # don't shrink into pure overhead
    cap_rows = max(_round_up(pl.cdiv(n_rows, min_steps), 8), floor_rows)
    return max(8, min(budget_rows, cap_rows))


def _tiled_matmul(x, w, *, tn, vmem_limit_bytes):
    n, k = x.shape
    m = w.shape[1]
    cost = pl.CostEstimate(
        flops=2 * n * k * m,
        transcendentals=0,
        bytes_accessed=(n * k + k * m + n * m) * 4,
    )
    return pl.pallas_call(
        _matmul_kernel,
        out_shape=jax.ShapeDtypeStruct((n, m), jnp.float32),
        grid=(pl.cdiv(n, tn),),
        in_specs=[
            pl.BlockSpec((tn, k), lambda i: (i, 0)),   # x: streamed over rows
            pl.BlockSpec((k, m), lambda i: (0, 0)),    # W: fetched once, stays resident
        ],
        out_specs=pl.BlockSpec((tn, m), lambda i: (i, 0)),
        compiler_params=pltpu.CompilerParams(
            dimension_semantics=("parallel",),
            vmem_limit_bytes=vmem_limit_bytes,
        ),
        cost_estimate=cost,
    )(x, w)


def deep_linear_mlp(
    x,
    weights,
    alpha,
    *,
    vmem_tile_budget=24 * 1024 * 1024,   # double-buffered x/out tiles budget
    vmem_limit_bytes=32 * 1024 * 1024,   # scoped VMEM limit (safe on v5e/v6e/v7x)
    min_grid_steps=4,                    # lets the row axis shard across 2 TCs on v7x
):
    """DeepLinearMLP.forward: out = x @ (multi_dot(weights) * alpha).

    x: (N, d0) f32; weights: list of (d_i, d_{i+1}) f32; alpha: scalar.
    """
    n, d0 = x.shape
    d_out = weights[-1].shape[1]

    # Collapse the weight chain once (tiny matmuls, outside the kernel) + fold alpha.
    w = weights[0].astype(jnp.float32)
    for wi in weights[1:]:
        w = jnp.dot(w, wi, preferred_element_type=jnp.float32)
    w = w * jnp.asarray(alpha, jnp.float32)

    # Lane-packing factor: fold r consecutive rows into one >=128-lane-dense row.
    r = 1
    if 0 < d_out < 128 and 128 % d_out == 0:
        r_cand = 128 // d_out
        if n % r_cand == 0 and n >= r_cand and r_cand * d0 <= 16384:
            r = r_cand
    # TODO(synk): when N is not divisible by r we fall back to the unpacked layout;
    # packing only the divisible prefix would require an extra output concatenate pass.

    if r > 1:
        xp = x.reshape(n // r, r * d0)                       # contiguous reshape (bitcast)
        wp = jnp.kron(jnp.eye(r, dtype=jnp.float32), w)      # block-diagonal collapsed weight
        tn = _pick_row_tile(
            n // r, r * (d0 + d_out) * 4, wp.size * 4, vmem_tile_budget, min_grid_steps
        )
        out = _tiled_matmul(xp, wp, tn=tn, vmem_limit_bytes=vmem_limit_bytes)
        return out.reshape(n, d_out)                         # contiguous reshape (bitcast)

    tn = _pick_row_tile(n, (d0 + d_out) * 4, w.size * 4, vmem_tile_budget, min_grid_steps)
    return _tiled_matmul(x, w, tn=tn, vmem_limit_bytes=vmem_limit_bytes)


if __name__ == "__main__":
    key = jax.random.PRNGKey(0)

    # 3 stacked linear layers with dims 32 -> 64 -> 32 -> 16 (consistent with the module).
    dims = [32, 64, 32, 16]
    keys = jax.random.split(key, len(dims) + 2)

    weights = []
    alpha = 1.0
    for i in range(len(dims) - 1):
        d_in, d_o = dims[i], dims[i + 1]
        weights.append(jax.random.normal(keys[i], (d_in, d_o), dtype=jnp.float32))
        alpha *= 1.0 / (d_in ** 0.5)      # per-layer alpha, mimics 1/sqrt(fan_in)

    def ref_fn(xx):
        wr = weights[0]
        for wi in weights[1:]:
            wr = wr @ wi
        return xx @ (wr * jnp.float32(alpha))

    fn = jax.jit(deep_linear_mlp)

    # 1) Tiny batch -> single-step lane-packed path (8 rows fold into one 128-lane row).
    x_small = jax.random.normal(keys[-3], (8, dims[0]), dtype=jnp.float32)
    out_small = jax.block_until_ready(fn(x_small, weights, alpha))
    assert out_small.shape == (8, dims[-1]), out_small.shape
    assert jnp.allclose(out_small, ref_fn(x_small), rtol=1e-4, atol=1e-4), float(
        jnp.max(jnp.abs(out_small - ref_fn(x_small)))
    )

    # 2) Ragged N (1030: not divisible by the pack factor or the tile) ->
    #    unpacked cdiv grid, no pad/slice, ragged last block.
    x_rag = jax.random.normal(keys[-2], (1030, dims[0]), dtype=jnp.float32)
    out_rag = jax.block_until_ready(fn(x_rag, weights, alpha))
    assert out_rag.shape == (1030, dims[-1]), out_rag.shape
    assert jnp.allclose(out_rag, ref_fn(x_rag), rtol=1e-4, atol=1e-4), float(
        jnp.max(jnp.abs(out_rag - ref_fn(x_rag)))
    )

    # 3) Larger divisible N -> multi-step lane-packed path (exercises the
    #    "parallel" grid with >= 4 steps and 128-lane-dense stores).
    x_big = jax.random.normal(keys[-1], (8192, dims[0]), dtype=jnp.float32)
    out_big = jax.block_until_ready(fn(x_big, weights, alpha))
    assert out_big.shape == (8192, dims[-1]), out_big.shape
    assert jnp.allclose(out_big, ref_fn(x_big), rtol=1e-4, atol=1e-4), float(
        jnp.max(jnp.abs(out_big - ref_fn(x_big)))
    )

    print("KERNEL_OK")
</pallas_src>

<mosaic_0001>
module attributes {stable_mosaic.version = 11 : i64} {
  func.func @_matmul_kernel(%arg0: i32, %arg1: memref<1x256xf32, #tpu.memory_space<vmem>>, %arg2: memref<256x128xf32, #tpu.memory_space<vmem>>, %arg3: memref<1x128xf32, #tpu.memory_space<vmem>>) attributes {dimension_semantics = [#tpu.dimension_semantics<parallel>], iteration_bounds = array<i64: 1>, scalar_prefetch = 0 : i64, scratch_operands = 0 : i64, tpu.core_type = #tpu.core_type<tc>, window_params = [{transform_indices = @transform_0, window_bounds = array<i64: 1, 256>}, {pipeline_mode = #tpu.pipeline_mode<synchronous>, transform_indices = @transform_1, window_bounds = array<i64: 256, 128>}, {transform_indices = @transform_2, window_bounds = array<i64: 1, 128>}]} {
    %c0 = arith.constant 0 : index
    %c0_0 = arith.constant 0 : index
    %0 = vector.load %arg1[%c0, %c0_0] : memref<1x256xf32, #tpu.memory_space<vmem>>, vector<1x256xf32>
    %c0_1 = arith.constant 0 : index
    %c0_2 = arith.constant 0 : index
    %1 = vector.load %arg2[%c0_1, %c0_2] : memref<256x128xf32, #tpu.memory_space<vmem>>, vector<256x128xf32>
    %cst = arith.constant dense<0.000000e+00> : vector<1x128xf32>
    %2 = tpu.matmul %0, %1, %cst {dimension_numbers = #tpu.dot_dimension_numbers<[1], [0], [0], [1], [0, 0, 1, 1], [], []>} : vector<1x256xf32>, vector<256x128xf32>, vector<1x128xf32> -> vector<1x128xf32>
    %c0_3 = arith.constant 0 : index
    %c0_4 = arith.constant 0 : index
    %3 = vector.load %arg3[%c0_3, %c0_4] : memref<1x128xf32, #tpu.memory_space<vmem>>, vector<1x128xf32>
    tpu.vector_store %arg3[%c0_3, %c0_4], %2 {strides = array<i32>} : memref<1x128xf32, #tpu.memory_space<vmem>>, vector<1x128xf32>,
    return
  }
  func.func @transform_0(%arg0: i32) -> (i32, i32) {
    %c0_i32 = arith.constant 0 : i32
    %c0_i32_0 = arith.constant 0 : i32
    return %arg0, %c0_i32 : i32, i32
  }
  func.func @transform_1(%arg0: i32) -> (i32, i32) {
    %c0_i32 = arith.constant 0 : i32
    %c0_i32_0 = arith.constant 0 : i32
    %c0_i32_1 = arith.constant 0 : i32
    return %c0_i32, %c0_i32_0 : i32, i32
  }
  func.func @transform_2(%arg0: i32) -> (i32, i32) {
    %c0_i32 = arith.constant 0 : i32
    %c0_i32_0 = arith.constant 0 : i32
    return %arg0, %c0_i32 : i32, i32
  }
}

</mosaic_0001>

<bundles_post_ra>
// kernel: deep_linear_mlp.1
= control target key start
LH: loop header
LB: loop body
LE: loop exit
PB: predicated region body
PF: predicated region fallthrough
CT: control target
= control target key end

     0   :  { %v45_v0 = vlaneseq  ;;  %s314_s1 = inlined_call_operand.vmem [shape: f32[256,128], index: 1, kind: input, shape index: {}]   ;;  %s315_s0 = inlined_call_operand.vmem [shape: f32[1,256], index: 0, kind: input, shape index: {}]   ;;  %s316_s2 = inlined_call_operand.vmem [shape: f32[1,128], index: 2, kind: output, shape index: {}]  }
   0x1   :  { %v28_v1 = vld [vmem:[%s314_s1 + $0x80] sm:$0xff]  ;;  %v29_v2 = vld [vmem:[%s314_s1 + $0x88] sm:$0xff]  ;;  %v30_v6 = vld [vmem:[%s314_s1 + $0x90] sm:$0xff] }
   0x2   :  { %v12_v3 = vld [vmem:[%s314_s1] sm:$0xff]  ;;  %v165_v4 = vpack.c.bf16 %v29_v2, %v28_v1  ;;  %v13_v5 = vld [vmem:[%s314_s1 + $0x8] sm:$0xff]  ;;  %v31_v7 = vld [vmem:[%s314_s1 + $0x98] sm:$0xff]  ;;  %v46_v14 = vshrl.u32 %v45_v0, 7 }
   0x3   :  { %v167_v8 = vpack.c.bf16 %v13_v5, %v12_v3  ;;  %v169_v9 = vpack.c.bf16 %v31_v7, %v30_v6  ;;  %v14_v10 = vld [vmem:[%s314_s1 + $0x10] sm:$0xff]  ;;  %v15_v11 = vld [vmem:[%s314_s1 + $0x18] sm:$0xff]  ;;  %v32_v12 = vld [vmem:[%s314_s1 + $0xa0] sm:$0xff] }
   0x4   :  { %166 = vmatprep.subr.bf16.mxu0 %v165_v4  ;;  %v33_v13 = vld [vmem:[%s314_s1 + $0xa8] sm:$0xff]  ;;  %v171_v15 = vpack.c.bf16 %v15_v11, %v14_v10  ;;  %v16_v17 = vld [vmem:[%s314_s1 + $0x20] sm:$0xff]  ;;  %v34_v19 = vld [vmem:[%s314_s1 + $0xb0] sm:$0xff]  ;;  %v51_v21 = vsub.s32 1, %v46_v14  ;;  %v47_v52 = vsub.s32 0, %v46_v14 }
   0x5   :  { %168 = vmatpush3.bf16.msra.mxu0 %v167_v8  ;;  %v173_v16 = vpack.c.bf16 %v33_v13, %v32_v12  ;;  %v17_v18 = vld [vmem:[%s314_s1 + $0x28] sm:$0xff]  ;;  %v35_v20 = vld [vmem:[%s314_s1 + $0xb8] sm:$0xff]  ;;  %v18_v24 = vld [vmem:[%s314_s1 + $0x30] sm:$0xff] }
   0x6   :  { %170 = vmatprep.subr.bf16.mxu0 %v169_v9  ;;  %v175_v22 = vpack.c.bf16 %v17_v18, %v16_v17  ;;  %v177_v23 = vpack.c.bf16 %v35_v20, %v34_v19  ;;  %v19_v25 = vld [vmem:[%s314_s1 + $0x38] sm:$0xff]  ;;  %v36_v26 = vld [vmem:[%s314_s1 + $0xc0] sm:$0xff]  ;;  %v37_v27 = vld [vmem:[%s314_s1 + $0xc8] sm:$0xff] }
   0x7   :  { %v11_v28 = vld [vmem:[%s315_s0] sm:$0x3]  ;;  %v179_v30 = vpack.c.bf16 %v19_v25, %v18_v24  ;;  %v181_v31 = vpack.c.bf16 %v37_v27, %v36_v26  ;;  %v21_v33 = vld [vmem:[%s314_s1 + $0x48] sm:$0xff]  ;;  %v38_v34 = vld [vmem:[%s314_s1 + $0xd0] sm:$0xff] }
   0x8   :  { %v52_v29 = vrot.slane %v11_v28, %v51_v21  ;;  %v20_v32 = vld [vmem:[%s314_s1 + $0x40] sm:$0xff]  ;;  %v39_v35 = vld [vmem:[%s314_s1 + $0xd8] sm:$0xff]  ;;  %v22_v38 = vld [vmem:[%s314_s1 + $0x50] sm:$0xff]  ;;  %v48_v54 = vrot.slane %v11_v28, %v47_v52 }
   0x9   :  { %172 = vmatpush3.bf16.msra.mxu0 %v171_v15  ;;  %v183_v36 = vpack.c.bf16 %v21_v33, %v20_v32  ;;  %v185_v37 = vpack.c.bf16 %v39_v35, %v38_v34  ;;  %v23_v39 = vld [vmem:[%s314_s1 + $0x58] sm:$0xff]  ;;  %v40_v40 = vld [vmem:[%s314_s1 + $0xe0] sm:$0xff]  ;;  %v41_v41 = vld [vmem:[%s314_s1 + $0xe8] sm:$0xff] }
   0xa   :  { %174 = vmatprep.subr.bf16.mxu0 %v173_v16  ;;  %119 = vmatprep.mubr.f32.mxu0 %v52_v29  ;;  %v187_v42 = vpack.c.bf16 %v23_v39, %v22_v38  ;;  %v189_v43 = vpack.c.bf16 %v41_v41, %v40_v40  ;;  %v24_v44 = vld [vmem:[%s314_s1 + $0x60] sm:$0xff]  ;;  %v25_v45 = vld [vmem:[%s314_s1 + $0x68] sm:$0xff]  ;;  %v42_v46 = vld [vmem:[%s314_s1 + $0xf0] sm:$0xff] }
   0xb   :  { %v43_v47 = vld [vmem:[%s314_s1 + $0xf8] sm:$0xff]  ;;  %v191_v48 = vpack.c.bf16 %v25_v45, %v24_v44  ;;  %v26_v50 = vld [vmem:[%s314_s1 + $0x70] sm:$0xff] }
   0xc   :  { %v193_v49 = vpack.c.bf16 %v43_v47, %v42_v46  ;;  %v27_v51 = vld [vmem:[%s314_s1 + $0x78] sm:$0xff] }
   0xd   :  { %176 = vmatpush3.bf16.msra.mxu0 %v175_v22  ;;  %v195_v53 = vpack.c.bf16 %v27_v51, %v26_v50 }
   0xe   :  { %178 = vmatprep.subr.bf16.mxu0 %v177_v23 }
  0x11   :  { %180 = vmatpush3.bf16.msra.mxu0 %v179_v30 }
  0x12   :  { %182 = vmatprep.subr.bf16.mxu0 %v181_v31 }
  0x15   :  { %184 = vmatpush3.bf16.msra.mxu0 %v183_v36 }
  0x16   :  { %186 = vmatprep.subr.bf16.mxu0 %v185_v37 }
  0x19   :  { %188 = vmatpush3.bf16.msra.mxu0 %v187_v42 }
  0x1a   :  { %190 = vmatprep.subr.bf16.mxu0 %v189_v43 }
  0x1d   :  { %192 = vmatpush3.bf16.msra.mxu0 %v191_v48 }
  0x1e   :  { %194 = vmatprep.subr.bf16.mxu0 %v193_v49 }
  0x21   :  { %196 = vmatpush3.bf16.msra.mxu0 %v195_v53 }
  0x24   :  { %120 = vmatmul.mubr.f32.vlgmr.msra.gmra.mrb[0].mxu0 %v48_v54 }
  0xf7   :  { %v162_v55 = vpop.f32.mrb[0].mxu0 }
  0xf8   :  { %v163_v56 = vpop.f32.mrb[1].mxu0 }
  0xf9   :  { %v164_v57 = vadd.f32 %v163_v56, %v162_v55 }
  0xfb   :  { %125 = vst [vmem:[%s316_s2] sm:$0x1] %v164_v57 }

</bundles_post_ra>
